<compile_context>
chip_gen: v6e
topology: v6e:2x2x1
jax: 0.10.0
libtpu: 0.0.40
codegen_flags: <defaults>
</compile_context>

<pallas_src>
import jax
import jax.numpy as jnp
from jax.experimental import pallas as pl
from jax.experimental.pallas import tpu as pltpu


def _make_cnn_kernel(nb, l_out):
    """Kernel over one batch chunk of `nb` elements.

    x_ref: (nb*l_out, CK_pad)  stacked unfolded patches for nb batch elements
    w_ref: (CK_pad, E_pad)     conv weight reshaped for matmul (zero-padded)
    b_ref: (1, E_pad)          conv bias (zero-padded)
    o_ref: (nb, E_pad)         max-pooled output rows for this batch chunk
    """

    def kernel(x_ref, w_ref, b_ref, o_ref):
        # Single MXU call covering all nb batch elements of this grid step.
        s = jnp.dot(x_ref[...], w_ref[...],
                    preferred_element_type=jnp.float32)   # (nb*l_out, E_pad)
        # Per-batch global max over its own l_out rows (static unroll, nb<=8),
        # then ONE lane-dense full-block store.  Bias is added after the max.
        rows = [
            jnp.max(s[n * l_out:(n + 1) * l_out, :], axis=0, keepdims=True)
            for n in range(nb)
        ]
        pooled = jnp.concatenate(rows, axis=0)             # (nb, E_pad)
        o_ref[...] = (pooled + b_ref[...]).astype(o_ref.dtype)

    return kernel


def cnn_forward(x, weight, bias):
    """x: (N, C_in, L) f32; weight: (E, C_in, K); bias: (E,) -> (N, E)."""
    N, C_in, L = x.shape
    E, _, K = weight.shape
    L_out = L - K + 1
    CK = C_in * K

    # Alignment padding: lane-dense output (E -> multiple of 128), aligned
    # contraction dim (CK -> multiple of 8 for f32 sublanes).
    LANES, SUBL = 128, 8
    E_pad = ((E + LANES - 1) // LANES) * LANES
    CK_pad = ((CK + SUBL - 1) // SUBL) * SUBL

    # Batch chunking: several rows per grid step (amortizes per-step overhead),
    # but keep a "parallel" batch axis so large N uses both v7x TensorCores.
    NB = min(8, N)
    N_pad = ((N + NB - 1) // NB) * NB

    # im2col unfold (wrapper glue): (N, L_out, C_in*K), c-major then k.
    # TODO(synk): move the unfold in-kernel (K shifted matmuls) for long L.
    idx = jnp.arange(L_out)[:, None] + jnp.arange(K)[None, :]       # (L_out, K)
    x_unf = x[:, :, idx]                                            # (N, C_in, L_out, K)
    x_unf = jnp.transpose(x_unf, (0, 2, 1, 3)).reshape(N, L_out, CK)
    x_unf = jnp.pad(x_unf, ((0, N_pad - N), (0, 0), (0, CK_pad - CK)))
    x2 = x_unf.reshape(N_pad * L_out, CK_pad)                       # 2-D patch matrix

    w_mat = weight.reshape(E, CK).T                                 # (CK, E)
    w_mat = jnp.pad(w_mat, ((0, CK_pad - CK), (0, E_pad - E)))      # (CK_pad, E_pad)
    b_row = jnp.pad(bias.reshape(1, E), ((0, 0), (0, E_pad - E)))   # (1, E_pad)

    grid = (N_pad // NB,)
    out = pl.pallas_call(
        _make_cnn_kernel(NB, L_out),
        out_shape=jax.ShapeDtypeStruct((N_pad, E_pad), x.dtype),
        grid_spec=pltpu.PrefetchScalarGridSpec(
            num_scalar_prefetch=0,
            grid=grid,
            in_specs=[
                pl.BlockSpec((NB * L_out, CK_pad), lambda i: (i, 0)),
                pl.BlockSpec((CK_pad, E_pad), lambda i: (0, 0)),
                pl.BlockSpec((1, E_pad), lambda i: (0, 0)),
            ],
            out_specs=pl.BlockSpec((NB, E_pad), lambda i: (i, 0)),
        ),
        compiler_params=pltpu.CompilerParams(
            dimension_semantics=("parallel",)),
    )(x2, w_mat, b_row)

    return out[:N, :E]


if __name__ == "__main__":
    # Small shapes consistent with the module:
    #   ch_embed_size (C_in) = 4, embed_size (E) = 32, kernel_size (K) = 5
    #   batch N = 2, sequence length L = 16
    N, C_in, L = 2, 4, 16
    E, K = 32, 5

    key = jax.random.PRNGKey(0)
    kx, kw, kb = jax.random.split(key, 3)

    x = jax.random.normal(kx, (N, C_in, L), dtype=jnp.float32)

    # Deterministic parameter init mimicking nn.Conv1d default (uniform in
    # [-1/sqrt(C_in*K), 1/sqrt(C_in*K)]).
    bound = 1.0 / jnp.sqrt(jnp.float32(C_in * K))
    weight = jax.random.uniform(kw, (E, C_in, K), dtype=jnp.float32,
                                minval=-bound, maxval=bound)
    bias = jax.random.uniform(kb, (E,), dtype=jnp.float32,
                              minval=-bound, maxval=bound)

    out = cnn_forward(x, weight, bias)
    out = jax.block_until_ready(out)

    # Pure-JAX reference of conv1d + global max pool for a sanity check.
    ref_conv = jax.lax.conv_general_dilated(
        x, weight, window_strides=(1,), padding="VALID",
        dimension_numbers=("NCH", "OIH", "NCH")) + bias[None, :, None]
    ref = jnp.max(ref_conv, axis=-1)
    assert out.shape == (N, E)
    assert jnp.allclose(out, ref, atol=1e-5, rtol=1e-5)

    print("KERNEL_OK")
</pallas_src>

<mosaic_0001>
module attributes {stable_mosaic.version = 11 : i64} {
  func.func @kernel(%arg0: i32, %arg1: memref<24x24xf32, #tpu.memory_space<vmem>>, %arg2: memref<24x128xf32, #tpu.memory_space<vmem>>, %arg3: memref<1x128xf32, #tpu.memory_space<vmem>>, %arg4: memref<2x128xf32, #tpu.memory_space<vmem>>) attributes {dimension_semantics = [#tpu.dimension_semantics<parallel>], iteration_bounds = array<i64: 1>, scalar_prefetch = 0 : i64, scratch_operands = 0 : i64, tpu.core_type = #tpu.core_type<tc>, window_params = [{transform_indices = @transform_0, window_bounds = array<i64: 24, 24>}, {pipeline_mode = #tpu.pipeline_mode<synchronous>, transform_indices = @transform_1, window_bounds = array<i64: 24, 128>}, {pipeline_mode = #tpu.pipeline_mode<synchronous>, transform_indices = @transform_2, window_bounds = array<i64: 1, 128>}, {transform_indices = @transform_3, window_bounds = array<i64: 2, 128>}]} {
    %c0 = arith.constant 0 : index
    %c0_0 = arith.constant 0 : index
    %0 = vector.load %arg1[%c0, %c0_0] : memref<24x24xf32, #tpu.memory_space<vmem>>, vector<24x24xf32>
    %c0_1 = arith.constant 0 : index
    %c0_2 = arith.constant 0 : index
    %1 = vector.load %arg2[%c0_1, %c0_2] : memref<24x128xf32, #tpu.memory_space<vmem>>, vector<24x128xf32>
    %cst = arith.constant dense<0.000000e+00> : vector<24x128xf32>
    %2 = tpu.matmul %0, %1, %cst {dimension_numbers = #tpu.dot_dimension_numbers<[1], [0], [0], [1], [0, 0, 1, 1], [], []>} : vector<24x24xf32>, vector<24x128xf32>, vector<24x128xf32> -> vector<24x128xf32>
    %3 = vector.extract_strided_slice %2 {offsets = [0, 0], sizes = [12, 128], strides = [1, 1]} : vector<24x128xf32> to vector<12x128xf32>
    %cst_3 = arith.constant dense<0xFF800000> : vector<128xf32>
    %4 = vector.multi_reduction <maximumf>, %3, %cst_3 [0] : vector<12x128xf32> to vector<128xf32>
    %5 = vector.shape_cast %4 : vector<128xf32> to vector<1x128xf32>
    %6 = vector.extract_strided_slice %2 {offsets = [12, 0], sizes = [12, 128], strides = [1, 1]} : vector<24x128xf32> to vector<12x128xf32>
    %cst_4 = arith.constant dense<0xFF800000> : vector<128xf32>
    %7 = vector.multi_reduction <maximumf>, %6, %cst_4 [0] : vector<12x128xf32> to vector<128xf32>
    %8 = vector.shape_cast %7 : vector<128xf32> to vector<1x128xf32>
    %9 = tpu.concatenate %5, %8 in 0 : vector<1x128xf32>, vector<1x128xf32> -> vector<2x128xf32>
    %c0_5 = arith.constant 0 : index
    %c0_6 = arith.constant 0 : index
    %10 = vector.load %arg3[%c0_5, %c0_6] : memref<1x128xf32, #tpu.memory_space<vmem>>, vector<1x128xf32>
    %11 = vector.broadcast %10 : vector<1x128xf32> to vector<2x128xf32>
    %12 = arith.addf %9, %11 : vector<2x128xf32>
    %c0_7 = arith.constant 0 : index
    %c0_8 = arith.constant 0 : index
    %13 = vector.load %arg4[%c0_7, %c0_8] : memref<2x128xf32, #tpu.memory_space<vmem>>, vector<2x128xf32>
    tpu.vector_store %arg4[%c0_7, %c0_8], %12 {strides = array<i32>} : memref<2x128xf32, #tpu.memory_space<vmem>>, vector<2x128xf32>,
    return
  }
  func.func @transform_0(%arg0: i32) -> (i32, i32) {
    %c0_i32 = arith.constant 0 : i32
    %c0_i32_0 = arith.constant 0 : i32
    return %arg0, %c0_i32 : i32, i32
  }
  func.func @transform_1(%arg0: i32) -> (i32, i32) {
    %c0_i32 = arith.constant 0 : i32
    %c0_i32_0 = arith.constant 0 : i32
    %c0_i32_1 = arith.constant 0 : i32
    return %c0_i32, %c0_i32_0 : i32, i32
  }
  func.func @transform_2(%arg0: i32) -> (i32, i32) {
    %c0_i32 = arith.constant 0 : i32
    %c0_i32_0 = arith.constant 0 : i32
    %c0_i32_1 = arith.constant 0 : i32
    return %c0_i32, %c0_i32_0 : i32, i32
  }
  func.func @transform_3(%arg0: i32) -> (i32, i32) {
    %c0_i32 = arith.constant 0 : i32
    %c0_i32_0 = arith.constant 0 : i32
    return %arg0, %c0_i32 : i32, i32
  }
}

</mosaic_0001>

<bundles_post_ra>
// kernel: tpu_custom_call.1
= control target key start
LH: loop header
LB: loop body
LE: loop exit
PB: predicated region body
PF: predicated region fallthrough
CT: control target
= control target key end

     0   :  { %8 = vsyncpa [#allocation3], 0  ;;  %s330_s0 = inlined_call_operand.hbm [shape: f32[24,24], index: 0, kind: input, shape index: {}]   ;;  %s331_s1 = inlined_call_operand.hbm [shape: f32[24,128], index: 1, kind: input, shape index: {}]   ;;  %s332_s2 = inlined_call_operand.vmem [shape: f32[1,128], index: 2, kind: input, shape index: {}]   ;;  %s333_s3 = inlined_call_operand.hbm [shape: f32[2,128], index: 3, kind: output, shape index: {}]  }
   0x1   :  { %9 = vsyncpa [#allocation6], 0 }
   0x2   :  { %10 = vsyncpa [#allocation4], 0  ;;  %s288_s12 = smov [#allocation2]  }
   0x3   :  { %s16_s13 = sshll.u32 %s288_s12, 4  ;;  %s17_s13 = int_to_ptr.vmem [resolvable:$true] %s16_s13 }
   0x4   :  { %s230_s14 = scalar_lea.vmem %s17_s13, 384  ;;  %p235_p1 = scmp.lt.s32.totalorder %s17_s13, %s17_s13 }
   0x5   :  { %p231_p0 = scmp.ne.s32.totalorder %s17_s13, %s230_s14  ;;  %p236_p2 = scmp.lt.s32.totalorder %s230_s14, %s230_s14 }
   0x7   :  { %p237_p3 = por %p236_p2, %p235_p1 }
   0x9   :  { %p238_p4 = pnand %p237_p3, %p231_p0 }
   0xb   :  { %241 = shalt.err (!%p238_p4)
}
   0xc   :  { %s289_s15 = smov 128   ;;  %s290_s16 = smov 8  }
   0xd   :  { %22 = dma.hbm_to_vmem [thread:$0]  %s330_s0, 384, %s17_s13, [#allocation3], %s289_s15, %s289_s15, %s290_s16  }
   0xe   :  { %s291_s19 = smov [#allocation5]  }
   0xf   :  { %s28_s20 = sshll.u32 %s291_s19, 4  ;;  %s29_s20 = int_to_ptr.vmem [resolvable:$true] %s28_s20 }
  0x10   :  { %s250_s21 = scalar_lea.vmem %s29_s20, 384  ;;  %p255_p6 = scmp.lt.s32.totalorder %s29_s20, %s29_s20 }
  0x11   :  { %p251_p5 = scmp.ne.s32.totalorder %s29_s20, %s250_s21  ;;  %p256_p7 = scmp.lt.s32.totalorder %s250_s21, %s250_s21 }
  0x13   :  { %p257_p8 = por %p256_p7, %p255_p6 }
  0x15   :  { %p258_p9 = pnand %p257_p8, %p251_p5 }
  0x17   :  { %261 = shalt.err (!%p258_p9)
}
  0x18   :  { %34 = dma.hbm_to_vmem [thread:$0]  %s331_s1, 384, %s29_s20, [#allocation6], %s289_s15, %s289_s15, %s290_s16  }
  0x19   :  { %282 = dma.done.wait [#allocation3], 384  }
  0x1a   :  { %283 = vsyncadd [#allocation3], 4294966912 }
  0x1b   :  { %284 = dma.done.wait [#allocation6], 384  }
  0x1c   :  { %285 = vsyncadd [#allocation6], 4294966912  ;;  %v292_v0 = vmov 0.0   ;;  %vm293_vm0 = vmmov 0   ;;  %v48_v1 = vld [vmem:[#allocation5 + $0x10] sm:$0xff]  ;;  %v47_v2 = vld [vmem:[#allocation5 + $0x8] sm:$0xff] }
  0x1d   :  { %209 = vmatprep.subr.mxu1 %v292_v0  ;;  %194 = vmatprep.subr.mxu0 %v292_v0  ;;  %v46_v3 = vld [vmem:[#allocation5] sm:$0xff]  ;;  %v44_v4 = vld [vmem:[#allocation2 + $0x8] sm:$0xff]  ;;  %vm49_vm1 = vcmask 195584   ;;  %v43_v5 = vld [vmem:[#allocation2] sm:$0xff]  ;;  %vm139_vm2 = vcmask 1043456   ;;  %vm148_vm3 = vcmask 1047556  }
  0x1e   :  { %203 = vmatprep.mubr.msk.f32.mxu1 %vm293_vm0, %v292_v0  ;;  %200 = vmatprep.mubr.msk.f32.mxu0 %vm293_vm0, %v292_v0  ;;  %v45_v6 = vld [vmem:[#allocation2 + $0x10] sm:$0xff]  ;;  %vm157_vm4 = vcmask 1040384   ;;  %v187_v29 = vld [vmem:[%s332_s2] ss:$0 sm:$0xff]  ;;  %s294_s24 = smov [#allocation7]  }
  0x1f   :  { %212 = vmatpush3.msra.mxu1 %v48_v1  ;;  %195 = vmatpush3.msra.mxu0 %v48_v1  ;;  %s174_s25 = sshll.u32 %s294_s24, 4  ;;  %s175_s25 = int_to_ptr.vmem [resolvable:$true] %s174_s25 }
  0x20   :  { %210 = vmatprep.subr.mxu1 %v292_v0  ;;  %196 = vmatprep.subr.mxu0 %v292_v0  ;;  %s262_s26 = scalar_lea.vmem %s175_s25, 32  ;;  %p267_p11 = scmp.lt.s32.totalorder %s175_s25, %s175_s25 }
  0x21   :  { %213 = vmatpush3.msra.mxu1 %v47_v2  ;;  %197 = vmatpush3.msra.mxu0 %v47_v2  ;;  %p263_p10 = scmp.ne.s32.totalorder %s175_s25, %s262_s26  ;;  %p268_p12 = scmp.lt.s32.totalorder %s262_s26, %s262_s26 }
  0x22   :  { %211 = vmatprep.subr.mxu1 %v292_v0  ;;  %198 = vmatprep.subr.mxu0 %v292_v0 }
  0x23   :  { %214 = vmatpush3.msra.mxu1 %v46_v3  ;;  %199 = vmatpush3.msra.mxu0 %v46_v3  ;;  %p269_p13 = por %p268_p12, %p267_p11 }
  0x24   :  { %204 = vmatmul.mubr.msk.f32.vlgmr.msra.gmra.mxu1 %vm49_vm1, %v44_v4  ;;  %201 = vmatmul.mubr.msk.f32.vlgmr.msra.gmra.mxu0 %vm49_vm1, %v43_v5 }
  0x25   :  { %206 = vmatprep.mubr.msk.f32.mxu1 %vm293_vm0, %v292_v0  ;;  %p270_p0 = pnand %p269_p13, %p263_p10 }
  0x28   :  { %207 = vmatmul.mubr.msk.f32.gmra.mxu1 %vm49_vm1, %v45_v6 }
  0xe4   :  { %v130_v7 = vpop.f32.mrf.mxu1  ;;  %v125_v8 = vpop.f32.mrf.mxu0 }
  0xe5   :  { %v140_v9 = vsel %vm139_vm2, %v130_v7, -inf  ;;  %v149_v15 = vsel %vm148_vm3, %v130_v7, -inf }
  0xe6   :  { %v141_v10 = vmax.f32 %v125_v8, %v140_v9  ;;  %v205_v11 = vpop.f32.mrf.mxu1  ;;  %v202_v12 = vpop.f32.mrf.mxu0 }
  0xe8   :  { %v142_v13 = vrot.slane %v141_v10, 4  ;;  %v135_v14 = vpop.f32.mrf.mxu1 }
  0xe9   :  { %v150_v16 = vmax.f32 %v149_v15, %v135_v14 }
  0xea   :  { %v143_v17 = vmax.f32 %v141_v10, %v142_v13  ;;  %v208_v18 = vpop.f32.mrf.mxu1 }
  0xeb   :  { %v151_v19 = vrot.slane %v150_v16, 4 }
  0xec   :  { %v144_v20 = vrot.slane %v143_v17, 2 }
  0xed   :  { %v152_v21 = vmax.f32 %v150_v16, %v151_v19 }
  0xee   :  { %v145_v22 = vmax.f32 %v143_v17, %v144_v20 }
  0xef   :  { %v153_v23 = vrot.slane %v152_v21, 2 }
  0xf0   :  { %v146_v24 = vrot.slane %v145_v22, 1 }
  0xf1   :  { %v154_v25 = vmax.f32 %v152_v21, %v153_v23 }
  0xf2   :  { %v147_v27 = vmax.f32 %v145_v22, %v146_v24 }
  0xf3   :  { %v155_v26 = vrot.slane %v154_v25, 1 }
  0xf5   :  { %v156_v28 = vmax.f32 %v154_v25, %v155_v26 }
  0xf7   :  { %v158_v30 = vsel %vm157_vm4, %v147_v27, %v156_v28 }
  0xf8   :  { %v166_v31 = vadd.f32 %v187_v29, %v158_v30 }
  0xfa   :  { %167 = vst [vmem:[#allocation7] sm:$0x3] %v166_v31 }
  0xfb   :  { %273 = shalt.err (!%p270_p0)
}
  0xfc   :  { %177 = dma.vmem_to_hbm [thread:$0]  %s175_s25, 32, %s333_s3, [#allocation4]  }
  0xfd   :  { %286 = dma.done.wait [#allocation4], 32  }
  0xfe   :  { %287 = vsyncadd [#allocation4], 4294967264 }
  0xff   :  { %181 = vsyncpa [#allocation3], 1 }
 0x100   :  { %182 = vsyncpa [#allocation6], 1 }
 0x101   :  { %183 = vsyncpa [#allocation4], 1 }

</bundles_post_ra>
